<compile_context>
chip_gen: v7x
topology: tpu7x:2x2x1
jax: 0.10.0
libtpu: 0.0.40
codegen_flags: <defaults>
</compile_context>

<pallas_src>
import functools

import jax
import jax.numpy as jnp
from jax.experimental import pallas as pl
from jax.experimental.pallas import tpu as pltpu


def _score_loss_kernel(scale_ref, sigma_ref, temb_ref,
                       audio_ref, z_ref, mel_ref, w_ref, loss_ref,
                       *, inv_n, sub):
    # scale_ref : (B,) f32 SMEM   alpha[ts]
    # sigma_ref : (B,) f32 SMEM   sqrt(1 - alpha[ts]^2)   (precomputed)
    # temb_ref  : (B,) f32 SMEM   ts / T
    # audio_ref : (1, tile_q, WIDE)  producer dtype, VMEM
    # z_ref     : (1, tile_q, WIDE)  bf16, VMEM
    # mel_ref   : (1, tile_q, 8*M)   bf16, VMEM
    # w_ref     : (8*M, WIDE)        bf16, VMEM (grid-resident block-diag weight)
    # loss_ref  : (1, 1, sub, WIDE)  f32, resident accumulator across q
    b = pl.program_id(0)          # batch              ("parallel")
    q = pl.program_id(2)          # frame-group tile   ("arbitrary" / reduction)
    nq = pl.num_programs(2)

    # ---- per-batch scalars from SMEM (cheap scalar reads) -------------------
    s = scale_ref[b]
    sig = sigma_ref[b]
    temb = temb_ref[b]

    # ---- upcast in-kernel (bf16 producers halve the dominant HBM stream) ----
    audio = audio_ref[0].astype(jnp.float32)              # (tile_q, WIDE)
    z = z_ref[0].astype(jnp.float32)                      # (tile_q, WIDE)

    # ---- q(x_t | x_0): noisy = alpha_t * x0 + sqrt(1 - alpha_t^2) * z -------
    noisy = s * audio + sig * z

    # ---- synthetic score net: block-diagonal mel upsampling on the MXU ------
    # mel_ref[0] is already in the same "wide" layout as audio/z, so the f32
    # matmul result adds in directly -- no reshape/relayout on the data path.
    mel_up = jnp.dot(mel_ref[0], w_ref[...],
                     preferred_element_type=jnp.float32)  # (tile_q, WIDE) f32
    e = jnp.tanh(noisy + mel_up + temb)                   # only EUP op here

    # ---- L1 partial sums accumulated per sublane across frame tiles ---------
    @pl.when(q == 0)
    def _init():
        loss_ref[...] = jnp.zeros_like(loss_ref)

    diff = jnp.abs(e - z)                                 # (tile_q, WIDE)
    # Fold rows in groups of `sub`: pure VPU adds, no cross-sublane XLU reduce.
    part = diff.reshape(-1, sub, diff.shape[-1]).sum(axis=0)   # (sub, WIDE)
    loss_ref[0, 0] += part

    @pl.when(q == nq - 1)
    def _finalize():
        loss_ref[...] = loss_ref[...] * inv_n             # mean over the L samples


def _pick_tile_q(Q, wide, itemsize, cap_bytes=2 * 1024 * 1024):
    """Largest divisor of Q that is a multiple of 8 (sublane tile) and keeps
    the per-step audio block <= ~2 MiB (amortizes the ~0.35us/step overhead,
    comfortably inside default scoped VMEM with double buffering on all gens).
    Falls back to a single full-extent tile if Q is not a multiple of 8."""
    if Q % 8 != 0:
        return Q                       # block == full dim -> always legal
    cap = max(8, min(Q, cap_bytes // (itemsize * wide)))
    best = 8
    for cand in range(8, cap + 1, 8):
        if Q % cand == 0:
            best = cand
    return best


def score_loss_pallas(audios, mels, ts, alpha, w_up, *, rng_key, tile_q=None):
    """audios: (B,1,L), mels: (B,F,M), ts: (B,1,1) i32, alpha: (T,) f32,
    w_up: (M,K) synthetic upsampler, L = F*K.  Returns theta_loss: (B,) f32."""
    B, _, L = audios.shape
    _, F, M = mels.shape
    Mw, K = w_up.shape
    assert Mw == M
    assert F * K == L, "audio length must equal frames * hop"
    assert F % 8 == 0, "frame count must be a multiple of 8 (wide layout)"
    assert (8 * K) % 128 == 0, "hop size must be a multiple of 16 (lane-dense)"
    # TODO(synk): other hop sizes would need lane padding + masking.

    WIDE = 8 * K                       # lane-dense minor dim (>= 128)
    Q = F // 8                         # frame groups of 8

    # ---- diffusion scalars (SMEM): alpha[ts], sqrt(1-alpha^2), t embedding --
    T = int(alpha.shape[0])
    t_flat = ts.reshape(B)
    scale = alpha[t_flat].astype(jnp.float32)                   # (B,)
    sigma = jnp.sqrt(jnp.maximum(1.0 - scale * scale, 0.0))     # (B,) precomputed
    temb = t_flat.astype(jnp.float32) / float(T)                # (B,)

    # ---- z ~ N(0,1), sampled like the reference (outside the "model") -------
    # Generated directly in bf16 (no extra cast pass) to halve its HBM stream;
    # upcast to f32 inside the kernel.
    z = jax.random.normal(rng_key, (B, Q, WIDE), dtype=jnp.bfloat16)

    # ---- wide, lane-dense views ----------------------------------------------
    # Keep the producer's dtype for audio: a bf16 producer halves the dominant
    # HBM stream for free; an eager wrapper-side cast would add a full pass.
    audio_wide = audios.reshape(B, Q, WIDE)
    mel_packed = mels.reshape(B, Q, 8 * M).astype(jnp.bfloat16)  # 128-wide minor
    # Block-diagonal weight so the matmul output lands directly in wide layout.
    w_blk = jnp.kron(jnp.eye(8, dtype=w_up.dtype), w_up).astype(jnp.bfloat16)

    # ---- tiling / grid -------------------------------------------------------
    if tile_q is None:
        tile_q = _pick_tile_q(Q, WIDE, jnp.dtype(audio_wide.dtype).itemsize)
    assert Q % tile_q == 0
    assert tile_q % 8 == 0 or tile_q == Q
    nQ = Q // tile_q
    sub = 8 if tile_q % 8 == 0 else tile_q                # accumulator rows

    # Megacore coverage when B is small/odd: split the reduction into 2
    # parallel partial accumulators when the tile count allows it.
    n_split = 2 if (nQ >= 2 and nQ % 2 == 0) else 1
    q_per_split = nQ // n_split

    smem = pl.BlockSpec(memory_space=pltpu.MemorySpace.SMEM)
    kernel = functools.partial(_score_loss_kernel, inv_n=1.0 / float(L), sub=sub)

    lane_loss = pl.pallas_call(
        kernel,
        out_shape=jax.ShapeDtypeStruct((B, n_split, sub, WIDE), jnp.float32),
        grid=(B, n_split, q_per_split),
        in_specs=[
            smem, smem, smem,                                             # scale, sigma, temb
            pl.BlockSpec((1, tile_q, WIDE),
                         lambda b, p, q: (b, p * q_per_split + q, 0)),    # audio
            pl.BlockSpec((1, tile_q, WIDE),
                         lambda b, p, q: (b, p * q_per_split + q, 0)),    # z (bf16)
            pl.BlockSpec((1, tile_q, 8 * M),
                         lambda b, p, q: (b, p * q_per_split + q, 0)),    # mel (bf16)
            pl.BlockSpec((8 * M, WIDE), lambda b, p, q: (0, 0)),          # W_blk (resident)
        ],
        out_specs=pl.BlockSpec((1, 1, sub, WIDE),
                               lambda b, p, q: (b, p, 0, 0)),
        compiler_params=pltpu.CompilerParams(
            # batch + split across TensorCores; frame axis is the reduction.
            dimension_semantics=("parallel", "parallel", "arbitrary"),
            # default scoped VMEM is ample at <=2 MiB blocks (per perf review).
        ),
    )(scale, sigma, temb, audio_wide, z, mel_packed, w_blk)

    # tiny host-side sum of the already /L-scaled per-(split, sublane, lane)
    # partials -> theta_loss per batch element
    return lane_loss.reshape(B, -1).sum(axis=-1)


if __name__ == "__main__":
    # ---- deterministic diffusion params (stand-in for diff_params dict) -----
    T = 200
    beta = jnp.linspace(1e-4, 0.02, T, dtype=jnp.float32)
    alpha = jnp.sqrt(jnp.cumprod(1.0 - beta))                  # alpha_t, (T,)

    # ---- small deterministic shapes implied by forward() --------------------
    B, F, M, K = 2, 256, 16, 128                               # batch, frames, mel dim, hop
    L = F * K                                                  # audio length = 32768

    key = jax.random.PRNGKey(0)
    k_mel, k_audio, k_ts, k_w, k_z = jax.random.split(key, 5)
    mels = jax.random.normal(k_mel, (B, F, M), dtype=jnp.float32)
    audios = jax.random.normal(k_audio, (B, 1, L), dtype=jnp.float32)
    ts = jax.random.randint(k_ts, (B, 1, 1), 0, T, dtype=jnp.int32)
    w_up = 0.05 * jax.random.normal(k_w, (M, K), dtype=jnp.float32)

    # tile_q=8 -> grid (B, 2, 2): exercises init / accumulate / finalize and
    # the 2-way parallel split of the reduction axis.
    theta_loss = score_loss_pallas(audios, mels, ts, alpha, w_up,
                                   rng_key=k_z, tile_q=8)
    theta_loss = jax.block_until_ready(theta_loss)
    assert theta_loss.shape == (B,)
    assert bool(jnp.all(jnp.isfinite(theta_loss)))

    # ---- pure-JAX reference with identical z and bf16-rounded mel/W ---------
    WIDE, Q = 8 * K, F // 8
    z_wide = jax.random.normal(k_z, (B, Q, WIDE), dtype=jnp.bfloat16)
    z_f = z_wide.astype(jnp.float32).reshape(B, 1, L)
    ns = alpha[ts.reshape(B)].reshape(B, 1, 1)
    sg = jnp.sqrt(1.0 - ns * ns)
    noisy = ns * audios + sg * z_f
    mel_b = mels.astype(jnp.bfloat16).astype(jnp.float32)
    w_b = w_up.astype(jnp.bfloat16).astype(jnp.float32)
    mel_up = jnp.einsum("bfm,mk->bfk", mel_b, w_b).reshape(B, 1, L)
    t_emb = ts.astype(jnp.float32) / float(T)
    e_ref = jnp.tanh(noisy + mel_up + t_emb)
    theta_ref = jnp.mean(jnp.abs(e_ref - z_f), axis=(1, 2))
    assert bool(jnp.allclose(theta_loss, theta_ref, rtol=1e-2, atol=1e-3)), (
        theta_loss, theta_ref)

    print("KERNEL_OK")
</pallas_src>

<mosaic_0001>
module attributes {stable_mosaic.version = 11 : i64} {
  func.func @_score_loss_kernel(%arg0: i32, %arg1: i32, %arg2: i32, %arg3: memref<2xf32, #tpu.memory_space<smem>>, %arg4: memref<2xf32, #tpu.memory_space<smem>>, %arg5: memref<2xf32, #tpu.memory_space<smem>>, %arg6: memref<1x8x1024xf32, #tpu.memory_space<vmem>>, %arg7: memref<1x8x1024xbf16, #tpu.memory_space<vmem>>, %arg8: memref<1x8x128xbf16, #tpu.memory_space<vmem>>, %arg9: memref<128x1024xbf16, #tpu.memory_space<vmem>>, %arg10: memref<1x1x8x1024xf32, #tpu.memory_space<vmem>>) attributes {dimension_semantics = [#tpu.dimension_semantics<parallel>, #tpu.dimension_semantics<parallel>, #tpu.dimension_semantics<arbitrary>], iteration_bounds = array<i64: 2, 2, 2>, scalar_prefetch = 0 : i64, scratch_operands = 0 : i64, tpu.core_type = #tpu.core_type<tc>, window_params = [{transform_indices = @transform_0, window_bounds = array<i64: 2>}, {transform_indices = @transform_1, window_bounds = array<i64: 2>}, {transform_indices = @transform_2, window_bounds = array<i64: 2>}, {transform_indices = @transform_3, window_bounds = array<i64: 1, 8, 1024>}, {transform_indices = @transform_4, window_bounds = array<i64: 1, 8, 1024>}, {transform_indices = @transform_5, window_bounds = array<i64: 1, 8, 128>}, {pipeline_mode = #tpu.pipeline_mode<synchronous>, transform_indices = @transform_6, window_bounds = array<i64: 128, 1024>}, {transform_indices = @transform_7, window_bounds = array<i64: 1, 1, 8, 1024>}]} {
    %0 = arith.index_cast %arg0 : i32 to index
    %1 = memref.load %arg3[%0] : memref<2xf32, #tpu.memory_space<smem>>
    %2 = arith.index_cast %arg0 : i32 to index
    %3 = memref.load %arg4[%2] : memref<2xf32, #tpu.memory_space<smem>>
    %4 = arith.index_cast %arg0 : i32 to index
    %5 = memref.load %arg5[%4] : memref<2xf32, #tpu.memory_space<smem>>
    %c0 = arith.constant 0 : index
    %c0_0 = arith.constant 0 : index
    %c0_1 = arith.constant 0 : index
    %6 = vector.load %arg6[%c0, %c0_0, %c0_1] : memref<1x8x1024xf32, #tpu.memory_space<vmem>>, vector<1x8x1024xf32>
    %7 = vector.shape_cast %6 : vector<1x8x1024xf32> to vector<8x1024xf32>
    %c0_2 = arith.constant 0 : index
    %c0_3 = arith.constant 0 : index
    %c0_4 = arith.constant 0 : index
    %8 = vector.load %arg7[%c0_2, %c0_3, %c0_4] : memref<1x8x1024xbf16, #tpu.memory_space<vmem>>, vector<1x8x1024xbf16>
    %9 = vector.shape_cast %8 : vector<1x8x1024xbf16> to vector<8x1024xbf16>
    %10 = arith.extf %9 : vector<8x1024xbf16> to vector<8x1024xf32>
    %11 = vector.broadcast %1 : f32 to vector<8x1024xf32>
    %12 = arith.mulf %11, %7 : vector<8x1024xf32>
    %13 = vector.broadcast %3 : f32 to vector<8x1024xf32>
    %14 = arith.mulf %13, %10 : vector<8x1024xf32>
    %15 = arith.addf %12, %14 : vector<8x1024xf32>
    %c0_5 = arith.constant 0 : index
    %c0_6 = arith.constant 0 : index
    %c0_7 = arith.constant 0 : index
    %16 = vector.load %arg8[%c0_5, %c0_6, %c0_7] : memref<1x8x128xbf16, #tpu.memory_space<vmem>>, vector<1x8x128xbf16>
    %17 = vector.shape_cast %16 : vector<1x8x128xbf16> to vector<8x128xbf16>
    %c0_8 = arith.constant 0 : index
    %c0_9 = arith.constant 0 : index
    %18 = vector.load %arg9[%c0_8, %c0_9] : memref<128x1024xbf16, #tpu.memory_space<vmem>>, vector<128x1024xbf16>
    %cst = arith.constant dense<0.000000e+00> : vector<8x1024xf32>
    %19 = tpu.matmul %17, %18, %cst {dimension_numbers = #tpu.dot_dimension_numbers<[1], [0], [0], [1], [0, 0, 1, 1], [], []>} : vector<8x128xbf16>, vector<128x1024xbf16>, vector<8x1024xf32> -> vector<8x1024xf32>
    %20 = arith.addf %15, %19 : vector<8x1024xf32>
    %21 = vector.broadcast %5 : f32 to vector<8x1024xf32>
    %22 = arith.addf %20, %21 : vector<8x1024xf32>
    %23 = math.tanh %22 : vector<8x1024xf32>
    %c0_i32 = arith.constant 0 : i32
    %24 = arith.cmpi eq, %arg2, %c0_i32 : i32
    %25 = arith.extui %24 : i1 to i32
    %c0_i32_10 = arith.constant 0 : i32
    %26 = arith.cmpi ne, %25, %c0_i32_10 : i32
    scf.if %26 {
      %cst_21 = arith.constant 0.000000e+00 : f32
      %40 = vector.broadcast %cst_21 : f32 to vector<1x1x8x1024xf32>
      %c0_22 = arith.constant 0 : index
      %c0_23 = arith.constant 0 : index
      %c0_24 = arith.constant 0 : index
      %c0_25 = arith.constant 0 : index
      %41 = vector.load %arg10[%c0_22, %c0_23, %c0_24, %c0_25] : memref<1x1x8x1024xf32, #tpu.memory_space<vmem>>, vector<1x1x8x1024xf32>
      tpu.vector_store %arg10[%c0_22, %c0_23, %c0_24, %c0_25], %40 {strides = array<i32>} : memref<1x1x8x1024xf32, #tpu.memory_space<vmem>>, vector<1x1x8x1024xf32>,
    } else {
    }
    %27 = arith.subf %23, %10 : vector<8x1024xf32>
    %28 = math.absf %27 : vector<8x1024xf32>
    %29 = vector.shape_cast %28 : vector<8x1024xf32> to vector<1x8x1024xf32>
    %cst_11 = arith.constant dense<0.000000e+00> : vector<8x1024xf32>
    %30 = vector.multi_reduction <add>, %29, %cst_11 [0] : vector<1x8x1024xf32> to vector<8x1024xf32>
    %c0_12 = arith.constant 0 : index
    %c0_13 = arith.constant 0 : index
    %c0_14 = arith.constant 0 : index
    %c0_15 = arith.constant 0 : index
    %31 = vector.load %arg10[%c0_12, %c0_13, %c0_14, %c0_15] : memref<1x1x8x1024xf32, #tpu.memory_space<vmem>>, vector<1x1x8x1024xf32>
    %32 = vector.shape_cast %31 : vector<1x1x8x1024xf32> to vector<8x1024xf32>
    %33 = arith.addf %32, %30 : vector<8x1024xf32>
    %c0_16 = arith.constant 0 : index
    %c0_17 = arith.constant 0 : index
    %c0_18 = arith.constant 0 : index
    %c0_19 = arith.constant 0 : index
    %34 = vector.load %arg10[%c0_16, %c0_17, %c0_18, %c0_19] : memref<1x1x8x1024xf32, #tpu.memory_space<vmem>>, vector<1x1x8x1024xf32>
    %35 = vector.shape_cast %34 : vector<1x1x8x1024xf32> to vector<8x1024xf32>
    %36 = vector.shape_cast %33 : vector<8x1024xf32> to vector<1x1x8x1024xf32>
    tpu.vector_store %arg10[%c0_16, %c0_17, %c0_18, %c0_19], %36 {strides = array<i32>} : memref<1x1x8x1024xf32, #tpu.memory_space<vmem>>, vector<1x1x8x1024xf32>,
    %c1_i32 = arith.constant 1 : i32
    %37 = arith.cmpi eq, %arg2, %c1_i32 : i32
    %38 = arith.extui %37 : i1 to i32
    %c0_i32_20 = arith.constant 0 : i32
    %39 = arith.cmpi ne, %38, %c0_i32_20 : i32
    scf.if %39 {
      %c0_21 = arith.constant 0 : index
      %c0_22 = arith.constant 0 : index
      %c0_23 = arith.constant 0 : index
      %c0_24 = arith.constant 0 : index
      %40 = vector.load %arg10[%c0_21, %c0_22, %c0_23, %c0_24] : memref<1x1x8x1024xf32, #tpu.memory_space<vmem>>, vector<1x1x8x1024xf32>
      %cst_25 = arith.constant 3.05175781E-5 : f32
      %41 = vector.broadcast %cst_25 : f32 to vector<1x1x8x1024xf32>
      %42 = arith.mulf %40, %41 : vector<1x1x8x1024xf32>
      %c0_26 = arith.constant 0 : index
      %c0_27 = arith.constant 0 : index
      %c0_28 = arith.constant 0 : index
      %c0_29 = arith.constant 0 : index
      %43 = vector.load %arg10[%c0_26, %c0_27, %c0_28, %c0_29] : memref<1x1x8x1024xf32, #tpu.memory_space<vmem>>, vector<1x1x8x1024xf32>
      tpu.vector_store %arg10[%c0_26, %c0_27, %c0_28, %c0_29], %42 {strides = array<i32>} : memref<1x1x8x1024xf32, #tpu.memory_space<vmem>>, vector<1x1x8x1024xf32>,
    } else {
    }
    return
  }
  func.func @transform_0(%arg0: i32, %arg1: i32, %arg2: i32) -> i32 {
    %c0_i32 = arith.constant 0 : i32
    %c0_i32_0 = arith.constant 0 : i32
    return %c0_i32 : i32
  }
  func.func @transform_1(%arg0: i32, %arg1: i32, %arg2: i32) -> i32 {
    %c0_i32 = arith.constant 0 : i32
    %c0_i32_0 = arith.constant 0 : i32
    return %c0_i32 : i32
  }
  func.func @transform_2(%arg0: i32, %arg1: i32, %arg2: i32) -> i32 {
    %c0_i32 = arith.constant 0 : i32
    %c0_i32_0 = arith.constant 0 : i32
    return %c0_i32 : i32
  }
  func.func @transform_3(%arg0: i32, %arg1: i32, %arg2: i32) -> (i32, i32, i32) {
    %c2_i32 = arith.constant 2 : i32
    %0 = arith.muli %arg1, %c2_i32 : i32
    %1 = arith.addi %0, %arg2 : i32
    %c0_i32 = arith.constant 0 : i32
    %c0_i32_0 = arith.constant 0 : i32
    return %arg0, %1, %c0_i32 : i32, i32, i32
  }
  func.func @transform_4(%arg0: i32, %arg1: i32, %arg2: i32) -> (i32, i32, i32) {
    %c2_i32 = arith.constant 2 : i32
    %0 = arith.muli %arg1, %c2_i32 : i32
    %1 = arith.addi %0, %arg2 : i32
    %c0_i32 = arith.constant 0 : i32
    %c0_i32_0 = arith.constant 0 : i32
    return %arg0, %1, %c0_i32 : i32, i32, i32
  }
  func.func @transform_5(%arg0: i32, %arg1: i32, %arg2: i32) -> (i32, i32, i32) {
    %c2_i32 = arith.constant 2 : i32
    %0 = arith.muli %arg1, %c2_i32 : i32
    %1 = arith.addi %0, %arg2 : i32
    %c0_i32 = arith.constant 0 : i32
    %c0_i32_0 = arith.constant 0 : i32
    return %arg0, %1, %c0_i32 : i32, i32, i32
  }
  func.func @transform_6(%arg0: i32, %arg1: i32, %arg2: i32) -> (i32, i32) {
    %c0_i32 = arith.constant 0 : i32
    %c0_i32_0 = arith.constant 0 : i32
    %c0_i32_1 = arith.constant 0 : i32
    return %c0_i32, %c0_i32_0 : i32, i32
  }
  func.func @transform_7(%arg0: i32, %arg1: i32, %arg2: i32) -> (i32, i32, i32, i32) {
    %c0_i32 = arith.constant 0 : i32
    %c0_i32_0 = arith.constant 0 : i32
    %c0_i32_1 = arith.constant 0 : i32
    return %arg0, %arg1, %c0_i32, %c0_i32_0 : i32, i32, i32, i32
  }
}

</mosaic_0001>

<bundles_post_ra>
// kernel: tpu_custom_call.1
= control target key start
LH: loop header
LB: loop body
LE: loop exit
PB: predicated region body
PF: predicated region fallthrough
CT: control target
= control target key end

     0   :  { %s2628_s0 = inlined_call_operand.hbm [shape: f32[2], index: 0, kind: input, shape index: {}]   ;;  %s2629_s1 = inlined_call_operand.vmem [shape: f32[2], index: 1, kind: input, shape index: {}]   ;;  %s2630_s2 = inlined_call_operand.vmem [shape: f32[2], index: 2, kind: input, shape index: {}]   ;;  %s2631_s3 = inlined_call_operand.hbm [shape: f32[2,32,1024], index: 3, kind: input, shape index: {}]   ;;  %s2632_s4 = inlined_call_operand.hbm [shape: bf16[2,32,1024], index: 4, kind: input, shape index: {}]   ;;  %s2633_s5 = inlined_call_operand.hbm [shape: bf16[2,32,128], index: 5, kind: input, shape index: {}]   ;;  %s2634_s6 = inlined_call_operand.hbm [shape: bf16[128,1024], index: 6, kind: input, shape index: {}]   ;;  %s2635_s7 = inlined_call_operand.hbm [shape: f32[2,2,8,1024], index: 7, kind: output, shape index: {}]  }
   0x1   :  { %2660 = sst [smem:[#allocation39_spill]] %s2628_s0 }
   0x2   :  { %2661 = sst [smem:[#allocation40_spill]] %s2629_s1 }
   0x3   :  { %2662 = sst [smem:[#allocation41_spill]] %s2630_s2 }
   0x4   :  { %2663 = sst [smem:[#allocation42_spill]] %s2631_s3 }
   0x5   :  { %2664 = sst [smem:[#allocation43_spill]] %s2632_s4 }
   0x6   :  { %2665 = sst [smem:[#allocation44_spill]] %s2633_s5 }
   0x7   :  { %2666 = sst [smem:[#allocation45_spill]] %s2634_s6 }
   0x8   :  { %2667 = sst [smem:[#allocation46_spill]] %s2635_s7 }
   0x9   :  { %12 = vsyncpa [#allocation5], 0 }
   0xa   :  { %13 = vsyncpa [#allocation6], 0 }
   0xb   :  { %14 = vsyncpa [#allocation9], 0 }
   0xc   :  { %15 = vsyncpa [#allocation3], 0 }
   0xd   :  { %17 = vsyncpa [#allocation3 + $0x1], 0 }
   0xe   :  { %18 = vsyncpa [#allocation12], 0 }
   0xf   :  { %20 = vsyncpa [#allocation12 + $0x1], 0 }
  0x10   :  { %21 = vsyncpa [#allocation15], 0 }
  0x11   :  { %22 = vsyncpa [#allocation4], 0 }
  0x12   :  { %24 = vsyncpa [#allocation4 + $0x1], 0  ;;  %s2068_s24 = smov 0   ;;  %s2070_s25 = smov 0  }
  0x13   :  { %s2072_s26 = smov 0   ;;  %s2074_s27 = smov 0  }
  0x14   :  { %s2076_s28 = smov 0   ;;  %s2078_s29 = smov 0  }
  0x15   :  { %s2080_s30 = smov 0   ;;  %s2082_s8 = smov 0  }
  0x16   :  { %s2084_s9 = smov 0   ;;  %s2086_s10 = smov 0  }
  0x17   :  { %s2088_s11 = smov 0   ;;  %s2090_s12 = smov 0  }
  0x18   :  { %s2092_s13 = smov 0  }
  0x19 LB: > { %2668 = sst [smem:[#allocation24_spill]] %s1966_s24  ;;  %s42_s14 = sadd.s32 1, %s2002_s10  ;;  %s2014_s13 = sphi %s2092_s13, %s30_s13   ;;  %s2010_s12 = sphi %s2090_s12, %s2742_s12   ;;  %s2006_s11 = sphi %s2088_s11, %s2735_s11   ;;  %s2002_s10 = sphi %s2086_s10, %s2734_s10   ;;  %s1998_s9 = sphi %s2084_s9, %s2741_s9   ;;  %s1994_s8 = sphi %s2082_s8, %s2733_s8   ;;  %s1990_s30 = sphi %s2080_s30, %s2732_s30   ;;  %s1986_s29 = sphi %s2078_s29, %s2731_s29   ;;  %s1982_s28 = sphi %s2076_s28, %s2740_s28   ;;  %s1978_s27 = sphi %s2074_s27, %s2739_s27   ;;  %s1974_s26 = sphi %s2072_s26, %s2729_s26   ;;  %s1970_s25 = sphi %s2070_s25, %s2738_s25   ;;  %s1966_s24 = sphi %s2068_s24, %s2737_s24  }
  0x1a   : > { %2669 = sst [smem:[#allocation25_spill]] %s1974_s26  ;;  %s45_s15 = sadd.s32 1, %s2006_s11 }
  0x1b   : > { %2670 = sst [smem:[#allocation26_spill]] %s1986_s29  ;;  %p43_p0 = scmp.ge.s32.totalorder %s42_s14, 2 }
  0x1c   : > { %2671 = sst [smem:[#allocation27_spill]] %s1990_s30  ;;  %s49_s16 = sadd.s32 1, %s2010_s12 }
  0x1d   : > { %2672 = sst [smem:[#allocation28_spill]] %s1994_s8  ;;  %s1399_s17 = sshll.u32 %s2006_s11, 1 }
  0x1e   : > { %2673 = sst [smem:[#allocation29_spill]] %s1998_s9  ;;  %s125_s18 = sadd.s32 1, %s1986_s29 }
  0x1f   : > { %2674 = sst [smem:[#allocation30_spill]] %s2002_s10  ;;  %s2744_s14 = smov (%p43_p0, %s42_s14), 0 }
  0x20   : > { %2675 = sst [smem:[#allocation31_spill]] %s2006_s11  ;;  %s2746_s15 = smov (!%p43_p0, %s45_s15), %s2006_s11 }
  0x21   : > { %2676 = sst [smem:[#allocation32_spill]] %s2014_s13  ;;  %s2142_s19 = sadd.s32 %s2002_s10, %s1399_s17 }
  0x22   : > { %2677 = sst [smem:[#allocation33_spill]] %s2744_s14  ;;  %p132_p1 = scmp.ne.s32.totalorder %s1986_s29, %s1982_s28 }
  0x23   : > { %p47_p2 = scmp.ge.s32.totalorder %s2746_s15, 2  ;;  %p133_p3 = scmp.eq.s32.totalorder %s2014_s13, 0 }
  0x24   : > { %s238_s20 = sadd.s32 1, %s1974_s26  ;;  %p1561_p7 = scmp.lt.s32.totalorder %s2014_s13, 8 }
  0x25   : > { %s2748_s15 = smov (%p47_p2, %s2746_s15), 0  ;;  %s2750_s16 = smov (!%p47_p2, %s49_s16), %s2010_s12 }
  0x26   : > { %2678 = sst [smem:[#allocation34_spill]] %s2748_s15  ;;  %s1400_s21 = sshll.u32 %s2748_s15, 1 }
  0x27   : > { %p2154_p5 = por %p133_p3, %p132_p1  ;;  %p51_p6 = scmp.ge.s32.totalorder %s2750_s16, 2 }
  0x28   : > { %s119_s23 = sadd.s32 %s1400_s21, %s2744_s14  ;;  %s234_s10 = ssub.s32 %s2006_s11, %s2748_s15 }
  0x29   : > { %s121_s17 = ssub.s32 %s2142_s19, %s119_s23  ;;  %s2752_s16 = smov (%p51_p6, %s2750_s16), 0 }
  0x2a   : > { %2680 = sst [smem:[#allocation35_spill]] %s2752_s16  ;;  %s120_s7 = ssub.s32 %s2010_s12, %s2752_s16 }
  0x2b   : > { %s2168_s8 = sand.u32 1, %s1986_s29   ;;  %s122_s30 = sor.u32 %s121_s17, %s120_s7 }
  0x2c   : > { %s235_s9 = sor.u32 %s234_s10, %s120_s7  ;;  %p123_p8 = scmp.eq.s32.totalorder %s122_s30, 0 }
  0x2d   : > { %p236_p9 = scmp.eq.s32.totalorder %s235_s9, 0  ;;  %s1413_s5 = sshll.u32 %s2142_s19, 3 }
  0x2e   : > { %s1414_s3 = sshll.u32 %s2010_s12, 5  ;;  %p2182_p10 = pnand %p1561_p7, %p2154_p5 }
  0x2f   : > { %s2173_s6 = scalar_select %p123_p8, %s1986_s29, %s125_s18  }
  0x30   : > { %s2176_s21 = scalar_select %p236_p9, %s1974_s26, %s238_s20  }
  0x31   : > { %2681 = sst [smem:[#allocation36_spill]] %s2173_s6  ;;  %s2178_s23 = sadd.s32 %s1414_s3, %s1413_s5 }
  0x32   : > { %2682 = sst [smem:[#allocation37_spill]] %s2176_s21  ;;  %s342_s16 = sand.u32 1, %s2014_s13  }
  0x33   : > { %s2683_s15 = scalar_select %p2182_p10, 1, 0 }
  0x34   : > { %s1416_s17 = sshll.u32 %s2168_s8, 5  ;;  %s1420_s7 = sshll.u32 %s2178_s23, 6 }
  0x35   : > { %s2684_s4 = sld [smem:[#allocation43_spill]]  ;;  %s346_s3 = scalar_lea.vmem [#allocation11], %s1416_s17 }
  0x36   : > { %s358_s5 = sshll.u32 %s346_s3, 4  ;;  %s2196_s18 = scalar_lea.sflag [#allocation12], %s342_s16  ;;  %s2194_s5 = int_to_ptr.vmem [resolvable:$true] %s358_s5 }
  0x37   : > { %p2202_p12 = pneg %p2182_p10 }
  0x39   : > { %s2685_s22 = scalar_select %p2202_p12, 1, 0 }
  0x3b   : > { %s2192_s10 = scalar_lea.hbm %s2684_s4, %s1420_s7  ;;  %s1700_s17 = scalar_lea.hbm %s2684_s4, 4096 }
  0x3c   : > { %s1695_s20 = scalar_lea.hbm %s2192_s10, 512  ;;  %p1701_p1 = scmp.lt.u32.totalorder %s2192_s10, %s2684_s4 }
  0x3d   : > { %p1696_p11 = scmp.ne.s32.totalorder %s2192_s10, %s1695_s20  ;;  %p1702_p2 = scmp.lt.u32.totalorder %s1700_s17, %s1695_s20 }
  0x3e   : > { %p1704_p5 = scmp.lt.u32.totalorder %s1695_s20, %s2192_s10 }
  0x3f   : > { %p1698_p13 = pnand %p2202_p12, %p1696_p11  ;;  %p1703_p3 = por %p1702_p2, %p1701_p1 }
  0x41   : > { %p1699_p0 = pneg %p1698_p13  ;;  %p1705_p6 = por %p1704_p5, %p1703_p3 }
  0x43   : > { %p1706_p7 = pnand %p1705_p6, %p1699_p0 }
  0x45   : > { %1709 = shalt.err (!%p1706_p7)
}
  0x46   : > { %s1710_s16 = scalar_lea.vmem %s2194_s5, 512  ;;  %s2016_s7 = smov [#allocation11]  }
  0x47   : > { %p1711_p8 = scmp.ne.s32.totalorder %s2194_s5, %s1710_s16  ;;  %s1715_s30 = sshll.u32 %s2016_s7, 4  ;;  %s1716_s30 = int_to_ptr.vmem [resolvable:$false] %s1715_s30 }
  0x48   : > { %s1717_s9 = scalar_lea.vmem %s1716_s30, 1024  ;;  %p1718_p13 = scmp.lt.s32.totalorder %s2194_s5, %s1716_s30 }
  0x49   : > { %p1713_p9 = pnand %p1711_p8, %p2202_p12  ;;  %p1719_p4 = scmp.lt.s32.totalorder %s1717_s9, %s1710_s16 }
  0x4b   : > { %p1714_p11 = pneg %p1713_p9  ;;  %p1720_p1 = por %p1719_p4, %p1718_p13 }
  0x4d   : > { %p1721_p2 = pnand %p1720_p1, %p1714_p11 }
  0x4f   : > { %1724 = shalt.err (!%p1721_p2)
}
  0x50   : > { %1549 = dma.hbm_to_vmem [thread:$0]  (!%p2182_p10), %s2192_s10, 512, %s2194_s5, %s2196_s18  }
  0x51   : > { %s2227_s20 = sadd.s32 4294967295, %s2014_s13   ;;  %s1398_s17 = sadd.s32 4294967294, %s2014_s13  }
  0x52   : > { %p2647_p4 = scmp.eq.s32.totalorder %s2227_s20, 0  ;;  %p248_p0 = scmp.ne.s32.totalorder %s1974_s26, %s1970_s25 }
  0x53   : > { %p249_p3 = scmp.eq.s32.totalorder %s2227_s20, 7  ;;  %p2686_p5 = scmp.ne.s32.totalorder %s1982_s28, %s1978_s27 }
  0x54   : > { %p254_p7 = scmp.ne.s32.totalorder %s1970_s25, %s1966_s24  ;;  %p255_p9 = scmp.eq.s32.totalorder %s1398_s17, 7 }
  0x55   : > { %p2239_p6 = por %p2647_p4, %p2686_p5  ;;  %p2245_p8 = por %p249_p3, %p248_p0 }
  0x56   : > { %p1405_p11 = scmp.ge.s32.totalorder %s2014_s13, 1  ;;  %p262_p13 = scmp.lt.s32.totalorder %s2014_s13, 9 }
  0x57   : > { %s2687_s3 = scalar_select %p2239_p6, 1, 0 }
  0x58   : > { %s2688_s16 = scalar_select %p2245_p8, 1, 0 }
  0x59   : > { %p2251_p1 = por %p255_p9, %p254_p7  ;;  %p2255_p2 = pnand %p1405_p11, %p262_p13 }
  0x5a   : > { %s2692_s1 = sld [smem:[#allocation40_spill]]  ;;  %s2693_s2 = sld [smem:[#allocation41_spill]] }
  0x5b   : > { %s2689_s10 = scalar_select %p2251_p1, 1, 0 }
  0x5c   : > { %s2691_s5 = scalar_select %p2255_p2, 1, 0 }
  0x5d   : > { %2690 = sst [smem:[#allocation38_spill]] %s2689_s10  ;;  %p1530_p0 = pneg %p2255_p2 }
  0x5e   : > { %s2017_s11 = smov [#allocation14]   ;;  %s2695_s0 = sld [smem:[#allocation39_spill]] }
  0x5f   : > { %p2269_p3 = pnand %p1530_p0, %p2647_p4  ;;  %s2275_s6 = sshll.u32 %s2017_s11, 4  ;;  %s306_s6 = int_to_ptr.vmem [resolvable:$true] %s2275_s6 }
  0x60   : > { %s284_s30 = sshll.u32 %s2692_s1, 4  ;;  %s295_s4 = sshll.u32 %s2693_s2, 4  ;;  %s285_s30 = int_to_ptr.vmem [resolvable:$true] %s284_s30  ;;  %s2273_s4 = int_to_ptr.vmem [resolvable:$true] %s295_s4 }
  0x61   : > { %p2285_p7 = pneg %p2269_p3 }
  0x64   : > { %s1725_s1 = scalar_lea.hbm %s2695_s0, 16 }
  0x65   : > { %p1726_p5 = scmp.ne.s32.totalorder %s2695_s0, %s1725_s1  ;;  %p1732_p13 = scmp.lt.u32.totalorder %s1725_s1, %s2695_s0 }
  0x67   : > { %p1728_p9 = pnand %p2285_p7, %p1726_p5 }
  0x69   : > { %p1729_p11 = pneg %p1728_p9 }
  0x6b   : > { %p1734_p0 = pnand %p1732_p13, %p1729_p11 }
  0x6d   : > { %1737 = shalt.err (!%p1734_p0)
}
  0x6e   : > { %s2018_s27 = smov [#allocation2]   ;;  %s1738_s7 = scalar_lea.vmem %s285_s30, 16 }
  0x6f   : > { %1533 = dma.hbm_to_smem (!%p2269_p3), %s2695_s0, 16, %s2018_s27, [#allocation5]  }
  0x70   : > { %p1739_p4 = scmp.ne.s32.totalorder %s285_s30, %s1738_s7  ;;  %p1746_p9 = scmp.lt.s32.totalorder %s285_s30, %s285_s30 }
  0x71   : > { %p1747_p8 = scmp.lt.s32.totalorder %s1738_s7, %s1738_s7 }
  0x72   : > { %p1741_p1 = pnand %p1739_p4, %p2285_p7 }
  0x73   : > { %p1748_p6 = por %p1747_p8, %p1746_p9 }
  0x74   : > { %p1742_p5 = pneg %p1741_p1 }
  0x76   : > { %p1749_p2 = pnand %p1748_p6, %p1742_p5 }
  0x78   : > { %1752 = shalt.err (!%p1749_p2)
}
  0x79   : > { %s2019_s1 = smov [#allocation7]   ;;  %s1753_s17 = scalar_lea.vmem %s2273_s4, 16 }
  0x7a   : > { %1536 = dma.vmem_to_smem (!%p2269_p3), %s285_s30, 16, %s2019_s1, [#allocation6]  }
  0x7b   : > { %p1754_p11 = scmp.ne.s32.totalorder %s2273_s4, %s1753_s17  ;;  %p1761_p4 = scmp.lt.s32.totalorder %s2273_s4, %s2273_s4 }
  0x7c   : > { %p1762_p1 = scmp.lt.s32.totalorder %s1753_s17, %s1753_s17 }
  0x7d   : > { %p1756_p13 = pnand %p1754_p11, %p2285_p7 }
  0x7e   : > { %p1763_p10 = por %p1762_p1, %p1761_p4 }
  0x7f   : > { %p1757_p0 = pneg %p1756_p13 }
  0x81   : > { %p1764_p8 = pnand %p1763_p10, %p1757_p0 }
  0x83   : > { %1767 = shalt.err (!%p1764_p8)
}
  0x84   : > { %s2020_s11 = smov [#allocation8]   ;;  %s2697_s29 = sld [smem:[#allocation45_spill]] }
  0x85   : > { %1539 = dma.vmem_to_smem (!%p2269_p3), %s2273_s4, 16, %s2020_s11, [#allocation9]  }
  0x8a   : > { %s2698_s21 = smov %s2697_s29  ;;  %s1768_s7 = scalar_lea.hbm %s2697_s29, 8192 }
  0x8b   : > { %p1769_p6 = scmp.ne.s32.totalorder %s2698_s21, %s1768_s7  ;;  %p1775_p5 = scmp.lt.u32.totalorder %s1768_s7, %s2698_s21 }
  0x8d   : > { %p1771_p2 = pnand %p1769_p6, %p2285_p7 }
  0x8f   : > { %p1772_p10 = pneg %p1771_p2 }
  0x91   : > { %p1777_p9 = pnand %p1775_p5, %p1772_p10 }
  0x93   : > { %1780 = shalt.err (!%p1777_p9)
}
  0x94   : > { %s1781_s26 = scalar_lea.vmem %s306_s6, 8192  ;;  %p1789_p4 = scmp.lt.s32.totalorder %s306_s6, %s306_s6 }
  0x95   : > { %p1782_p11 = scmp.ne.s32.totalorder %s306_s6, %s1781_s26  ;;  %p1790_p1 = scmp.lt.s32.totalorder %s1781_s26, %s1781_s26 }
  0x97   : > { %p1784_p13 = pnand %p1782_p11, %p2285_p7  ;;  %p1791_p8 = por %p1790_p1, %p1789_p4 }
  0x99   : > { %p1785_p0 = pneg %p1784_p13 }
  0x9b   : > { %p1792_p12 = pnand %p1791_p8, %p1785_p0 }
  0x9d   : > { %1795 = shalt.err (!%p1792_p12)
}
  0x9e   : > { %s2021_s0 = smov 512   ;;  %s2022_s2 = smov 32  }
  0x9f   : > { %1542 = dma.hbm_to_vmem [thread:$0]  (!%p2269_p3), %s2698_s21, 8192, %s306_s6, [#allocation15], %s2021_s0, %s2021_s0, %s2022_s2  }
  0xa0   : > { %s1411_s9 = sshll.u32 %s2168_s8, 6  ;;  %s1415_s30 = sshll.u32 %s2178_s23, 7 }
  0xa1   : > { %s2699_s29 = sld [smem:[#allocation42_spill]]  ;;  %s323_s17 = scalar_lea.vmem [#allocation10], %s1411_s9 }
  0xa2   : > { %s335_s10 = sshll.u32 %s323_s17, 4  ;;  %s1421_s14 = sshll.u32 %s2168_s8, 2  ;;  %s2338_s10 = int_to_ptr.vmem [resolvable:$true] %s335_s10 }
  0xa3   : > { %s320_s24 = scalar_lea.sflag [#allocation3], %s2168_s8  ;;  %p2701_p3 = scmp.ne.s32.totalorder %s2685_s22, 0 }
  0xa7   : > { %s2700_s7 = smov %s2699_s29  ;;  %s2336_s1 = scalar_lea.hbm %s2699_s29, %s1415_s30 }
  0xa8   : > { %s1796_s13 = scalar_lea.hbm %s2336_s1, 1024  ;;  %s1801_s0 = scalar_lea.hbm %s2700_s7, 8192 }
  0xa9   : > { %p1797_p12 = scmp.ne.s32.totalorder %s2336_s1, %s1796_s13  ;;  %p1802_p2 = scmp.lt.u32.totalorder %s2336_s1, %s2700_s7 }
  0xaa   : > { %p1803_p10 = scmp.lt.u32.totalorder %s1801_s0, %s1796_s13  ;;  %p1805_p9 = scmp.lt.u32.totalorder %s1796_s13, %s2336_s1 }
  0xab   : > { %p1799_p7 = pnand %p1797_p12, %p2701_p3 }
  0xac   : > { %p1804_p5 = por %p1803_p10, %p1802_p2 }
  0xad   : > { %p1800_p6 = pneg %p1799_p7 }
  0xae   : > { %p1806_p11 = por %p1805_p9, %p1804_p5 }
  0xb0   : > { %p1807_p13 = pnand %p1806_p11, %p1800_p6 }
  0xb2   : > { %1810 = shalt.err (!%p1807_p13)
}
  0xb3   : > { %s1811_s11 = scalar_lea.vmem %s2338_s10, 1024  ;;  %s2023_s9 = smov [#allocation10]  }
  0xb4   : > { %p1812_p0 = scmp.ne.s32.totalorder %s2338_s10, %s1811_s11  ;;  %s1816_s30 = sshll.u32 %s2023_s9, 4  ;;  %s1817_s30 = int_to_ptr.vmem [resolvable:$false] %s1816_s30 }
  0xb5   : > { %s1818_s27 = scalar_lea.vmem %s1817_s30, 2048  ;;  %p1819_p8 = scmp.lt.s32.totalorder %s2338_s10, %s1817_s30 }
  0xb6   : > { %p1814_p4 = pnand %p1812_p0, %p2701_p3  ;;  %p1820_p12 = scmp.lt.s32.totalorder %s1818_s27, %s1811_s11 }
  0xb8   : > { %p1815_p1 = pneg %p1814_p4  ;;  %p1821_p7 = por %p1820_p12, %p1819_p8 }
  0xba   : > { %p1822_p2 = pnand %p1821_p7, %p1815_p1 }
  0xbc   : > { %1825 = shalt.err (!%p1822_p2)
}
  0xbd   : > { %p2702_p6 = scmp.ne.s32.totalorder %s2683_s15, 0  ;;  %s1423_s13 = sshll.u32 %s2010_s12, 2 }
  0xbe   : > { %s376_s26 = sadd.s32 %s1423_s13, %s2142_s19  ;;  %s369_s29 = scalar_lea.vmem [#allocation13], %s1421_s14 }
  0xbf   : > { %1546 = dma.hbm_to_vmem [thread:$0]  (!%p2702_p6), %s2336_s1, 1024, %s2338_s10, %s320_s24  }
  0xc0   : > { %s380_s17 = sshll.u32 %s369_s29, 4  ;;  %s1424_s6 = sshll.u32 %s376_s26, 6  ;;  %s381_s17 = int_to_ptr.vmem [resolvable:$true] %s380_s17 }
  0xc1   : > { %s2703_s2 = sld [smem:[#allocation44_spill]] }
  0xc7   : > { %s378_s4 = scalar_lea.hbm %s2703_s2, %s1424_s6  ;;  %s1831_s24 = scalar_lea.hbm %s2703_s2, 512 }
  0xc8   : > { %s1826_s11 = scalar_lea.hbm %s378_s4, 64  ;;  %p1832_p11 = scmp.lt.u32.totalorder %s378_s4, %s2703_s2 }
  0xc9   : > { %p1827_p10 = scmp.ne.s32.totalorder %s378_s4, %s1826_s11  ;;  %p1833_p13 = scmp.lt.u32.totalorder %s1831_s24, %s1826_s11 }
  0xca   : > { %p1835_p4 = scmp.lt.u32.totalorder %s1826_s11, %s378_s4 }
  0xcb   : > { %p1829_p5 = pnand %p1827_p10, %p2701_p3  ;;  %p1834_p0 = por %p1833_p13, %p1832_p11 }
  0xcd   : > { %p1830_p9 = pneg %p1829_p5  ;;  %p1836_p1 = por %p1835_p4, %p1834_p0 }
  0xcf   : > { %p1837_p8 = pnand %p1836_p1, %p1830_p9 }
  0xd1   : > { %1840 = shalt.err (!%p1837_p8)
}
  0xd2   : > { %s1841_s8 = scalar_lea.vmem %s381_s17, 64  ;;  %s2024_s1 = smov [#allocation13]  }
  0xd3   : > { %p1842_p12 = scmp.ne.s32.totalorder %s381_s17, %s1841_s8  ;;  %s1846_s14 = sshll.u32 %s2024_s1, 4  ;;  %s1847_s14 = int_to_ptr.vmem [resolvable:$false] %s1846_s14 }
  0xd4   : > { %s1848_s27 = scalar_lea.vmem %s1847_s14, 128  ;;  %p1849_p10 = scmp.lt.s32.totalorder %s381_s17, %s1847_s14 }
  0xd5   : > { %p1844_p7 = pnand %p1842_p12, %p2701_p3  ;;  %p1850_p5 = scmp.lt.s32.totalorder %s1848_s27, %s1841_s8 }
  0xd7   : > { %p1845_p2 = pneg %p1844_p7  ;;  %p1851_p6 = por %p1850_p5, %p1849_p10 }
  0xd9   : > { %p1852_p11 = pnand %p1851_p6, %p1845_p2 }
  0xdb   : > { %1855 = shalt.err (!%p1852_p11)
}
  0xdc   : > { %p2704_p13 = scmp.ne.s32.totalorder %s2683_s15, 0  ;;  %p2705_p9 = scmp.ne.s32.totalorder %s2691_s5, 0 }
  0xdd   : > { %p2706_p0 = scmp.eq.s32.totalorder (!%p2705_p9), %s2227_s20, 0 }
  0xde   : > { %1552 = dma.hbm_to_vmem [thread:$0]  (!%p2704_p13), %s378_s4, 64, %s381_s17, %s2196_s18  }
  0xdf   : > { %389 = sbr.rel (%p2705_p9) target bundleno = 597 (0x255), region = 48 }
  0xe6   : > { %1937 = dma.done.wait (%p2706_p0), [#allocation5], 16   ;;  %p2707_p3 = pmov %p2706_p0 }
  0xe7   : > { %p2708_p4 = pmov %p2706_p0 }
  0xe8   : > { %1939 = vsyncadd (%p2707_p3), [#allocation5], 4294967280 }
  0xe9   : > { %1941 = dma.done.wait (%p2708_p4), [#allocation6], 16   ;;  %p2709_p1 = pmov %p2706_p0 }
  0xea   : > { %p2710_p6 = pmov %p2706_p0 }
  0xeb   : > { %1943 = vsyncadd (%p2709_p1), [#allocation6], 4294967280 }
  0xec   : > { %1945 = dma.done.wait (%p2710_p6), [#allocation9], 16   ;;  %p2711_p8 = pmov %p2706_p0 }
  0xed   : > { %s403_s15 = sand.u32 1, %s1982_s28   ;;  %p2712_p12 = scmp.ne.s32.totalorder %s2687_s3, 0 }
  0xee   : > { %1947 = vsyncadd (%p2711_p8), [#allocation9], 4294967280  ;;  %s1429_s18 = sshll.u32 %s403_s15, 6  ;;  %s404_s22 = scalar_lea.sflag [#allocation3], %s403_s15 }
  0xef   : > { %s2398_s5 = scalar_lea.vmem [#allocation10], %s1429_s18 }
  0xf0   : > { %1949 = dma.done.wait (%p2712_p12), %s404_s22, 1024  }
  0xf1   : > { %1951 = vsyncadd (%p2712_p12), %s404_s22, 4294966272  ;;  %s412_s13 = sand.u32 1, %s2227_s20   ;;  %s1430_s26 = sshll.u32 %s403_s15, 5 }
  0xf2   : > { %s413_s29 = scalar_lea.sflag [#allocation12], %s412_s13  ;;  %s2405_s17 = scalar_lea.vmem [#allocation11], %s1430_s26 }
  0xf3   : > { %1953 = dma.done.wait (%p2712_p12), %s413_s29, 576  }
  0xf4   : > { %1955 = vsyncadd (%p2712_p12), %s413_s29, 4294966720  ;;  %s1431_s6 = sshll.u32 %s403_s15, 2  ;;  %p2713_p7 = pmov %p2706_p0 }
  0xf5   : > { %s2411_s23 = scalar_lea.vmem [#allocation13], %s1431_s6 }
  0xf6   : > { %1957 = dma.done.wait (%p2713_p7), [#allocation15], 8192   ;;  %p2714_p2 = pmov %p2706_p0 }
  0xf8   : > { %1959 = vsyncadd (%p2714_p2), [#allocation15], 4294959104 }
  0xf9   : > { %434 = sfence }
  0xfa   : > { %s468_s0 = sand.u32 1, %s1970_s25   ;;  %v528_v0 = vld [vmem:[#allocation14] sm:$0xff]  ;;  %v529_v2 = vld [vmem:[#allocation14 + $0x8] sm:$0xff]  ;;  %v2025_v8 = vmov 0   ;;  %v530_v63 = vld [vmem:[#allocation14 + $0x10] sm:$0xff]  ;;  %s2715_s20 = sld [smem:[#allocation29_spill]] }
  0xfb   : > { %v532_v1 = vld [vmem:[#allocation14 + $0x20] sm:$0xff]  ;;  %s2420_s4 = sshll.u32 %s468_s0, 6  ;;  %v533_v4 = vld [vmem:[#allocation14 + $0x28] sm:$0xff]  ;;  %944 = vmatprep.mubr.bf16.mxu0 %v2025_v8  ;;  %985 = vmatprep.mubr.bf16.mxu1 %v2025_v8  ;;  %s2716_s24 = sld [smem:[#allocation27_spill]] }
  0xfc   : > { %v1435_v3 = vcombine.high %v528_v0, %v532_v1  ;;  %v1434_v5 = vcombine.low %v528_v0, %v532_v1  ;;  %v536_v6 = vld [vmem:[#allocation14 + $0x40] sm:$0xff]  ;;  %v1437_v9 = vcombine.high %v529_v2, %v533_v4  ;;  %v1436_v10 = vcombine.low %v529_v2, %v533_v4  ;;  %v537_v12 = vld [vmem:[#allocation14 + $0x48] sm:$0xff]  ;;  %v534_v0 = vld [vmem:[#allocation14 + $0x30] sm:$0xff]  ;;  %s2489_s30 = scalar_lea.vmem [#allocation16], %s2420_s4 }
  0xfd   : > { %v540_v7 = vld [vmem:[#allocation14 + $0x60] sm:$0xff]  ;;  %v541_v13 = vld [vmem:[#allocation14 + $0x68] sm:$0xff]  ;;  %v531_v1 = vld [vmem:[#allocation14 + $0x18] sm:$0xff] }
  0xfe   : > { %v1443_v11 = vcombine.high %v536_v6, %v540_v7  ;;  %v544_v14 = vld [vmem:[#allocation14 + $0x80] sm:$0xff]  ;;  %912 = vmatprep.subr.bf16.mxu0 %v1435_v3  ;;  %v1445_v15 = vcombine.high %v537_v12, %v541_v13  ;;  %v545_v17 = vld [vmem:[#allocation14 + $0x88] sm:$0xff]  ;;  %953 = vmatprep.subr.bf16.mxu1 %v1437_v9  ;;  %v1442_v19 = vcombine.low %v536_v6, %v540_v7  ;;  %v535_v2 = vld [vmem:[#allocation14 + $0x38] sm:$0xff] }
  0xff   : > { %v548_v16 = vld [vmem:[#allocation14 + $0xa0] sm:$0xff]  ;;  %v549_v18 = vld [vmem:[#allocation14 + $0xa8] sm:$0xff]  ;;  %913 = vmatpush1.bf16.msra.mxu0 %v1434_v5  ;;  %954 = vmatpush1.bf16.msra.mxu1 %v1436_v10  ;;  %v1444_v20 = vcombine.low %v537_v12, %v541_v13  ;;  %v1439_v5 = vcombine.high %v530_v63, %v534_v0  ;;  %v1441_v6 = vcombine.high %v531_v1, %v535_v2  ;;  %v538_v7 = vld [vmem:[#allocation14 + $0x50] sm:$0xff] }
 0x100   : > { %914 = vmatprep.subr.bf16.mxu0 %v1443_v11  ;;  %v1451_v21 = vcombine.high %v544_v14, %v548_v16  ;;  %955 = vmatprep.subr.bf16.mxu1 %v1445_v15  ;;  %v1453_v22 = vcombine.high %v545_v17, %v549_v18  ;;  %v552_v23 = vld [vmem:[#allocation14 + $0xc0] sm:$0xff]  ;;  %v553_v25 = vld [vmem:[#allocation14 + $0xc8] sm:$0xff]  ;;  %v1450_v27 = vcombine.low %v544_v14, %v548_v16  ;;  %v542_v9 = vld [vmem:[#allocation14 + $0x70] sm:$0xff]  ;;  %s478_s3 = sld [smem:[#allocation2 + %s2715_s20]] }
 0x101   : > { %v556_v24 = vld [vmem:[#allocation14 + $0xe0] sm:$0xff]  ;;  %v557_v26 = vld [vmem:[#allocation14 + $0xe8] sm:$0xff]  ;;  %v1452_v28 = vcombine.low %v545_v17, %v549_v18  ;;  %v539_v10 = vld [vmem:[#allocation14 + $0x58] sm:$0xff]  ;;  %v1438_v13 = vcombine.low %v530_v63, %v534_v0  ;;  %v1440_v14 = vcombine.low %v531_v1, %v535_v2  ;;  %v1447_v15 = vcombine.high %v538_v7, %v542_v9  ;;  %s479_s11 = sld [smem:[#allocation7 + %s2715_s20]]  ;;  %p1498_p10 = scmp.ne.s32.totalorder %s2716_s24, 0 }
 0x102   : > { %v1459_v29 = vcombine.high %v552_v23, %v556_v24  ;;  %v1461_v30 = vcombine.high %v553_v25, %v557_v26  ;;  %v560_v31 = vld [vmem:[#allocation14 + $0x100] sm:$0xff]  ;;  %v561_v33 = vld [vmem:[#allocation14 + $0x108] sm:$0xff]  ;;  %v1458_v35 = vcombine.low %v552_v23, %v556_v24  ;;  %v1460_v36 = vcombine.low %v553_v25, %v557_v26  ;;  %v543_v11 = vld [vmem:[#allocation14 + $0x78] sm:$0xff]  ;;  %s480_s9 = sld [smem:[#allocation8 + %s2715_s20]] }
 0x103   : > { %915 = vmatpush1.bf16.msra.mxu0 %v1442_v19  ;;  %956 = vmatpush1.bf16.msra.mxu1 %v1444_v20  ;;  %v564_v32 = vld [vmem:[#allocation14 + $0x120] sm:$0xff]  ;;  %v565_v34 = vld [vmem:[#allocation14 + $0x128] sm:$0xff]  ;;  %v2425_v12 = vld [vmem:[%s2411_s23] sm:$0xf]  ;;  %v1449_v16 = vcombine.high %v539_v10, %v543_v11 }
 0x104   : > { %916 = vmatprep.subr.bf16.mxu0 %v1451_v21  ;;  %957 = vmatprep.subr.bf16.mxu1 %v1453_v22  ;;  %v1467_v37 = vcombine.high %v560_v31, %v564_v32  ;;  %v1469_v38 = vcombine.high %v561_v33, %v565_v34  ;;  %v568_v39 = vld [vmem:[#allocation14 + $0x140] sm:$0xff]  ;;  %v569_v41 = vld [vmem:[#allocation14 + $0x148] sm:$0xff]  ;;  %v1466_v43 = vcombine.low %v560_v31, %v564_v32  ;;  %v546_v17 = vld [vmem:[#allocation14 + $0x90] sm:$0xff] }
 0x105   : > { %v572_v40 = vld [vmem:[#allocation14 + $0x160] sm:$0xff]  ;;  %v573_v42 = vld [vmem:[#allocation14 + $0x168] sm:$0xff]  ;;  %v1468_v44 = vcombine.low %v561_v33, %v565_v34  ;;  %v550_v18 = vld [vmem:[#allocation14 + $0xb0] sm:$0xff]  ;;  %v1446_v21 = vcombine.low %v538_v7, %v542_v9  ;;  %v1448_v22 = vcombine.low %v539_v10, %v543_v11 }
 0x106   : > { %v1475_v45 = vcombine.high %v568_v39, %v572_v40  ;;  %v1477_v46 = vcombine.high %v569_v41, %v573_v42  ;;  %v576_v47 = vld [vmem:[#allocation14 + $0x180] sm:$0xff]  ;;  %v577_v49 = vld [vmem:[#allocation14 + $0x188] sm:$0xff]  ;;  %v1474_v51 = vcombine.low %v568_v39, %v572_v40  ;;  %v1476_v52 = vcombine.low %v569_v41, %v573_v42  ;;  %v547_v19 = vld [vmem:[#allocation14 + $0x98] sm:$0xff] }
 0x107   : > { %917 = vmatpush1.bf16.msra.mxu0 %v1450_v27  ;;  %958 = vmatpush1.bf16.msra.mxu1 %v1452_v28  ;;  %v580_v48 = vld [vmem:[#allocation14 + $0x1a0] sm:$0xff]  ;;  %v581_v50 = vld [vmem:[#allocation14 + $0x1a8] sm:$0xff]  ;;  %v551_v20 = vld [vmem:[#allocation14 + $0xb8] sm:$0xff]  ;;  %v1455_v23 = vcombine.high %v546_v17, %v550_v18  ;;  %v510_v7 = vstv %s479_s11 }
 0x108   : > { %918 = vmatprep.subr.bf16.mxu0 %v1459_v29  ;;  %959 = vmatprep.subr.bf16.mxu1 %v1461_v30  ;;  %v1483_v53 = vcombine.high %v576_v47, %v580_v48  ;;  %v1485_v54 = vcombine.high %v577_v49, %v581_v50  ;;  %v584_v55 = vld [vmem:[#allocation14 + $0x1c0] sm:$0xff]  ;;  %v585_v57 = vld [vmem:[#allocation14 + $0x1c8] sm:$0xff]  ;;  %v1482_v59 = vcombine.low %v576_v47, %v580_v48  ;;  %v554_v25 = vld [vmem:[#allocation14 + $0xd0] sm:$0xff] }
 0x109   : > { %v588_v56 = vld [vmem:[#allocation14 + $0x1e0] sm:$0xff]  ;;  %v589_v58 = vld [vmem:[#allocation14 + $0x1e8] sm:$0xff]  ;;  %v1484_v60 = vcombine.low %v577_v49, %v581_v50  ;;  %v1457_v24 = vcombine.high %v547_v19, %v551_v20  ;;  %v558_v26 = vld [vmem:[#allocation14 + $0xf0] sm:$0xff]  ;;  %v1454_v29 = vcombine.low %v546_v17, %v550_v18  ;;  %v1456_v30 = vcombine.low %v547_v19, %v551_v20 }
 0x10a   : > { %v1491_v61 = vcombine.high %v584_v55, %v588_v56  ;;  %v1493_v62 = vcombine.high %v585_v57, %v589_v58  ;;  %v1490_v3 = vcombine.low %v584_v55, %v588_v56  ;;  %v1492_v4 = vcombine.low %v585_v57, %v589_v58  ;;  %v555_v27 = vld [vmem:[#allocation14 + $0xd8] sm:$0xff]  ;;  %v562_v33 = vld [vmem:[#allocation14 + $0x110] sm:$0xff]  ;;  %v483_v11 = vld [vmem:[%s2398_s5 + $0x10] sm:$0xff] }
 0x10b   : > { %919 = vmatpush1.bf16.msra.mxu0 %v1458_v35  ;;  %960 = vmatpush1.bf16.msra.mxu1 %v1460_v36  ;;  %v559_v28 = vld [vmem:[#allocation14 + $0xf8] sm:$0xff]  ;;  %v1463_v31 = vcombine.high %v554_v25, %v558_v26  ;;  %v566_v34 = vld [vmem:[#allocation14 + $0x130] sm:$0xff] }
 0x10c   : > { %920 = vmatprep.subr.bf16.mxu0 %v1467_v37  ;;  %961 = vmatprep.subr.bf16.mxu1 %v1469_v38  ;;  %v1465_v32 = vcombine.high %v555_v27, %v559_v28  ;;  %v563_v35 = vld [vmem:[#allocation14 + $0x118] sm:$0xff]  ;;  %v1462_v37 = vcombine.low %v554_v25, %v558_v26  ;;  %v1464_v38 = vcombine.low %v555_v27, %v559_v28  ;;  %v570_v40 = vld [vmem:[#allocation14 + $0x150] sm:$0xff]  ;;  %v1084_v28 = vstv %s480_s9 }
 0x10d   : > { %v567_v36 = vld [vmem:[#allocation14 + $0x138] sm:$0xff]  ;;  %v1471_v39 = vcombine.high %v562_v33, %v566_v34  ;;  %v574_v41 = vld [vmem:[#allocation14 + $0x170] sm:$0xff] }
 0x10e   : > { %v571_v42 = vld [vmem:[#allocation14 + $0x158] sm:$0xff]  ;;  %v578_v48 = vld [vmem:[#allocation14 + $0x190] sm:$0xff] }
 0x10f   : > { %921 = vmatpush1.bf16.msra.mxu0 %v1466_v43  ;;  %962 = vmatpush1.bf16.msra.mxu1 %v1468_v44  ;;  %v575_v43 = vld [vmem:[#allocation14 + $0x178] sm:$0xff]  ;;  %v1470_v44 = vcombine.low %v562_v33, %v566_v34  ;;  %v582_v49 = vld [vmem:[#allocation14 + $0x1b0] sm:$0xff] }
 0x110   : > { %922 = vmatprep.subr.bf16.mxu0 %v1475_v45  ;;  %963 = vmatprep.subr.bf16.mxu1 %v1477_v46  ;;  %v1472_v45 = vcombine.low %v563_v35, %v567_v36  ;;  %v1479_v46 = vcombine.high %v570_v40, %v574_v41  ;;  %v1481_v47 = vcombine.high %v571_v42, %v575_v43  ;;  %v579_v50 = vld [vmem:[#allocation14 + $0x198] sm:$0xff]  ;;  %v586_v56 = vld [vmem:[#allocation14 + $0x1d0] sm:$0xff] }
 0x111   : > { %v590_v57 = vld [vmem:[#allocation14 + $0x1f0] sm:$0xff]  ;;  %v587_v58 = vld [vmem:[#allocation14 + $0x1d8] sm:$0xff] }
 0x112   : > { %v1494_v0 = vcombine.low %v586_v56, %v590_v57  ;;  %v2436_v2 = vld [vmem:[%s2405_s17] sm:$0xff] }
 0x113   : > { %923 = vmatpush1.bf16.msra.mxu0 %v1474_v51  ;;  %964 = vmatpush1.bf16.msra.mxu1 %v1476_v52  ;;  %v583_v51 = vld [vmem:[#allocation14 + $0x1b8] sm:$0xff]  ;;  %v1478_v52 = vcombine.low %v570_v40, %v574_v41  ;;  %v494_v10 = vunpack.c.h.bf16 %v2436_v2 }
 0x114   : > { %924 = vmatprep.subr.bf16.mxu0 %v1483_v53  ;;  %965 = vmatprep.subr.bf16.mxu1 %v1485_v54  ;;  %v1480_v53 = vcombine.low %v571_v42, %v575_v43  ;;  %v1487_v54 = vcombine.high %v578_v48, %v582_v49  ;;  %v1489_v55 = vcombine.high %v579_v50, %v583_v51 }
 0x115   : > { %v512_v20 = vmul.f32 %v510_v7, %v494_v10 }
 0x117   : > { %925 = vmatpush1.bf16.msra.mxu0 %v1482_v59  ;;  %966 = vmatpush1.bf16.msra.mxu1 %v1484_v60  ;;  %v591_v59 = vld [vmem:[#allocation14 + $0x1f8] sm:$0xff]  ;;  %v1486_v60 = vcombine.low %v578_v48, %v582_v49  ;;  %v2470_v48 = vld [vmem:[%s2405_s17 + $0x18] sm:$0xff] }
 0x118   : > { %926 = vmatprep.subr.bf16.mxu0 %v1491_v61  ;;  %967 = vmatprep.subr.bf16.mxu1 %v1493_v62  ;;  %v1488_v61 = vcombine.low %v579_v50, %v583_v51  ;;  %v1495_v62 = vcombine.high %v586_v56, %v590_v57  ;;  %v1497_v63 = vcombine.high %v587_v58, %v591_v59  ;;  %v485_v50 = vld [vmem:[%s2398_s5 + $0x20] sm:$0xff]  ;;  %v499_v51 = vunpack.c.l.bf16 %v2470_v48  ;;  %v488_v56 = vld [vmem:[%s2398_s5 + $0x38] sm:$0xff] }
 0x119   : > { %v1496_v1 = vcombine.low %v587_v58, %v591_v59 }
 0x11b   : > { %927 = vmatpush1.bf16.msra.mxu0 %v1490_v3  ;;  %968 = vmatpush1.bf16.msra.mxu1 %v1492_v4  ;;  %v2439_v3 = vld [vmem:[%s2405_s17 + $0x8] sm:$0xff]  ;;  %v493_v4 = vunpack.c.l.bf16 %v2436_v2 }
 0x11c   : > { %994 = vmatprep.subr.bf16.mxu0 %v1439_v5  ;;  %1035 = vmatprep.subr.bf16.mxu1 %v1441_v6  ;;  %v481_v5 = vld [vmem:[%s2398_s5] sm:$0xff]  ;;  %v501_v6 = vstv %s478_s3  ;;  %v495_v9 = vunpack.c.l.bf16 %v2439_v3 }
 0x11d   : > { %v504_v17 = vmul.f32 %v501_v6, %v483_v11  ;;  %v506_v57 = vmul.f32 %v501_v6, %v485_v50 }
 0x11e   : > { %945 = vmatmul.mubr.bf16.vlgmr.msra.gmra.mrb[0].mxu0 %v2425_v12  ;;  %986 = vmatmul.mubr.bf16.vlgmr.msra.gmra.mrb[0].mxu1 %v2425_v12  ;;  %v513_v18 = vmul.f32 %v510_v7, %v495_v9 }
 0x11f   : > { %995 = vmatpush1.bf16.msra.mxu0 %v1438_v13  ;;  %1036 = vmatpush1.bf16.msra.mxu1 %v1440_v14  ;;  %v482_v13 = vld [vmem:[%s2398_s5 + $0x8] sm:$0xff]  ;;  %v496_v14 = vunpack.c.h.bf16 %v2439_v3 }
 0x120   : > { %996 = vmatprep.subr.bf16.mxu0 %v1447_v15  ;;  %1037 = vmatprep.subr.bf16.mxu1 %v1449_v16  ;;  %v502_v15 = vmul.f32 %v501_v6, %v481_v5  ;;  %v511_v16 = vmul.f32 %v510_v7, %v493_v4  ;;  %v503_v19 = vmul.f32 %v501_v6, %v482_v13 }
 0x121   : > { %1026 = vmatprep.mubr.bf16.mxu0 %v2025_v8  ;;  %1067 = vmatprep.mubr.bf16.mxu1 %v2025_v8  ;;  %v1473_v8 = vcombine.high %v563_v35, %v567_v36 }
 0x122   : > { %v520_v25 = vadd.f32 %v512_v20, %v503_v19 }
 0x123   : > { %997 = vmatpush1.bf16.msra.mxu0 %v1446_v21  ;;  %1038 = vmatpush1.bf16.msra.mxu1 %v1448_v22  ;;  %v514_v22 = vmul.f32 %v510_v7, %v496_v14 }
 0x124   : > { %998 = vmatprep.subr.bf16.mxu0 %v1455_v23  ;;  %1039 = vmatprep.subr.bf16.mxu1 %v1457_v24  ;;  %v519_v23 = vadd.f32 %v511_v16, %v502_v15  ;;  %v521_v24 = vadd.f32 %v513_v18, %v504_v17 }
 0x127   : > { %999 = vmatpush1.bf16.msra.mxu0 %v1454_v29  ;;  %1040 = vmatpush1.bf16.msra.mxu1 %v1456_v30 }
 0x128   : > { %1000 = vmatprep.subr.bf16.mxu0 %v1463_v31  ;;  %1041 = vmatprep.subr.bf16.mxu1 %v1465_v32 }
 0x12b   : > { %1001 = vmatpush1.bf16.msra.mxu0 %v1462_v37  ;;  %1042 = vmatpush1.bf16.msra.mxu1 %v1464_v38 }
 0x12c   : > { %1002 = vmatprep.subr.bf16.mxu0 %v1471_v39  ;;  %1043 = vmatprep.subr.bf16.mxu1 %v1473_v8 }
 0x12f   : > { %1003 = vmatpush1.bf16.msra.mxu0 %v1470_v44  ;;  %1044 = vmatpush1.bf16.msra.mxu1 %v1472_v45 }
 0x130   : > { %1004 = vmatprep.subr.bf16.mxu0 %v1479_v46  ;;  %1045 = vmatprep.subr.bf16.mxu1 %v1481_v47  ;;  %v2467_v47 = vld [vmem:[%s2405_s17 + $0x10] sm:$0xff] }
 0x131   : > { %v497_v49 = vunpack.c.l.bf16 %v2467_v47 }
 0x133   : > { %1005 = vmatpush1.bf16.msra.mxu0 %v1478_v52  ;;  %1046 = vmatpush1.bf16.msra.mxu1 %v1480_v53  ;;  %v498_v52 = vunpack.c.h.bf16 %v2467_v47  ;;  %v487_v53 = vld [vmem:[%s2398_s5 + $0x30] sm:$0xff]  ;;  %v515_v58 = vmul.f32 %v510_v7, %v497_v49 }
 0x134   : > { %1006 = vmatprep.subr.bf16.mxu0 %v1487_v54  ;;  %1047 = vmatprep.subr.bf16.mxu1 %v1489_v55  ;;  %v486_v54 = vld [vmem:[%s2398_s5 + $0x28] sm:$0xff]  ;;  %v500_v55 = vunpack.c.h.bf16 %v2470_v48  ;;  %v508_v59 = vmul.f32 %v501_v6, %v487_v53 }
 0x137   : > { %1007 = vmatpush1.bf16.msra.mxu0 %v1486_v60  ;;  %1048 = vmatpush1.bf16.msra.mxu1 %v1488_v61  ;;  %v517_v60 = vmul.f32 %v510_v7, %v499_v51  ;;  %v507_v61 = vmul.f32 %v501_v6, %v486_v54 }
 0x138   : > { %1008 = vmatprep.subr.bf16.mxu0 %v1495_v62  ;;  %1049 = vmatprep.subr.bf16.mxu1 %v1497_v63  ;;  %v516_v62 = vmul.f32 %v510_v7, %v498_v52  ;;  %v509_v63 = vmul.f32 %v501_v6, %v488_v56 }
 0x139   : > { %v525_v5 = vadd.f32 %v517_v60, %v508_v59 }
 0x13a   : > { %v524_v11 = vadd.f32 %v516_v62, %v507_v61 }
 0x13b   : > { %1009 = vmatpush1.bf16.msra.mxu0 %v1494_v0  ;;  %1050 = vmatpush1.bf16.msra.mxu1 %v1496_v1  ;;  %v518_v0 = vmul.f32 %v510_v7, %v500_v55  ;;  %v523_v1 = vadd.f32 %v515_v58, %v506_v57 }
 0x13d   : > { %v526_v13 = vadd.f32 %v518_v0, %v509_v63 }
 0x13e   : > { %1027 = vmatmul.mubr.bf16.vlgmr.msra.gmra.mrb[4].mxu0 %v2425_v12  ;;  %1068 = vmatmul.mubr.bf16.vlgmr.msra.gmra.mrb[4].mxu1 %v2425_v12  ;;  %v484_v12 = vld [vmem:[%s2398_s5 + $0x18] sm:$0xff] }
 0x13f   : > { %v505_v21 = vmul.f32 %v501_v6, %v484_v12 }
 0x141   : > { %v522_v26 = vadd.f32 %v514_v22, %v505_v21 }
 0x1f1   : > { %v946_v27 = vpop.f32.mrb[0].mxu0  ;;  %v987_v30 = vpop.f32.mrb[0].mxu1 }
 0x1f2   : > { %v1076_v29 = vadd.f32 %v946_v27, %v519_v23  ;;  %v948_v31 = vpop.f32.mrb[1].mxu0  ;;  %v1078_v32 = vadd.f32 %v987_v30, %v521_v24  ;;  %v989_v34 = vpop.f32.mrb[1].mxu1 }
 0x1f3   : > { %v1077_v33 = vadd.f32 %v948_v31, %v520_v25  ;;  %v950_v35 = vpop.f32.mrb[2].mxu0  ;;  %v1079_v37 = vadd.f32 %v989_v34, %v522_v26  ;;  %v991_v38 = vpop.f32.mrb[2].mxu1 }
 0x1f4   : > { %v1085_v36 = vadd.f32 %v1084_v28, %v1076_v29  ;;  %v951_v39 = vpop.f32.mrb[3].mxu0  ;;  %v1087_v8 = vadd.f32 %v1084_v28, %v1078_v32  ;;  %v992_v41 = vpop.f32.mrb[3].mxu1 }
 0x1f5   : > { %v1086_v40 = vadd.f32 %v1084_v28, %v1077_v33  ;;  %v1088_v42 = vadd.f32 %v1084_v28, %v1079_v37  ;;  %v2026_v33 = vmov (!%p1498_p10), 0.0  }
 0x1f6   : > { %1679 = vtanh.f32 %v1085_v36  ;;  %1105 = vst [vmem:[%s2489_s30] sm:$0xff] (!%p1498_p10), %v2026_v33  ;;  %1106 = vst [vmem:[%s2489_s30 + $0x8] sm:$0xff] (!%p1498_p10), %v2026_v33 }
 0x1f7   : > { %1681 = vtanh.f32 %v1087_v8  ;;  %1107 = vst [vmem:[%s2489_s30 + $0x10] sm:$0xff] (!%p1498_p10), %v2026_v33  ;;  %1108 = vst [vmem:[%s2489_s30 + $0x18] sm:$0xff] (!%p1498_p10), %v2026_v33 }
 0x1f8   : > { %1683 = vtanh.f32 %v1086_v40  ;;  %1109 = vst [vmem:[%s2489_s30 + $0x20] sm:$0xff] (!%p1498_p10), %v2026_v33  ;;  %1110 = vst [vmem:[%s2489_s30 + $0x28] sm:$0xff] (!%p1498_p10), %v2026_v33 }
 0x1f9   : > { %1685 = vtanh.f32 %v1088_v42  ;;  %1111 = vst [vmem:[%s2489_s30 + $0x30] sm:$0xff] (!%p1498_p10), %v2026_v33  ;;  %1112 = vst [vmem:[%s2489_s30 + $0x38] sm:$0xff] (!%p1498_p10), %v2026_v33 }
 0x200   : > { %v2458_v43 = vpop.eup %1679 }
 0x201   : > { %v2460_v44 = vpop.eup %1681 }
 0x202   : > { %v2462_v45 = vpop.eup %1683 }
 0x203   : > { %v2464_v46 = vpop.eup %1685 }
 0x211   : > { %v1028_v12 = vpop.f32.mrb[4].mxu0  ;;  %v1069_v16 = vpop.f32.mrb[4].mxu1 }
 0x212   : > { %v1080_v15 = vadd.f32 %v1028_v12, %v523_v1  ;;  %v1030_v17 = vpop.f32.mrb[5].mxu0  ;;  %v1082_v18 = vadd.f32 %v1069_v16, %v525_v5  ;;  %v1071_v20 = vpop.f32.mrb[5].mxu1 }
 0x213   : > { %v1081_v19 = vadd.f32 %v1030_v17, %v524_v11  ;;  %v1032_v21 = vpop.f32.mrb[6].mxu0  ;;  %v1083_v23 = vadd.f32 %v1071_v20, %v526_v13  ;;  %v1073_v24 = vpop.f32.mrb[6].mxu1 }
 0x214   : > { %v1089_v22 = vadd.f32 %v1084_v28, %v1080_v15  ;;  %v1033_v6 = vpop.f32.mrb[7].mxu0  ;;  %v1091_v25 = vadd.f32 %v1084_v28, %v1082_v18  ;;  %v1074_v7 = vpop.f32.mrb[7].mxu1 }
 0x215   : > { %v1090_v26 = vadd.f32 %v1084_v28, %v1081_v19  ;;  %v1092_v27 = vadd.f32 %v1084_v28, %v1083_v23 }
 0x216   : > { %1687 = vtanh.f32 %v1089_v22 }
 0x217   : > { %1689 = vtanh.f32 %v1091_v25 }
 0x218   : > { %1691 = vtanh.f32 %v1090_v26 }
 0x219   : > { %1693 = vtanh.f32 %v1092_v27 }
 0x21d   : > { %1104 = sbr.rel (%p1498_p10) target bundleno = 548 (0x224), region = 80 }
 0x220   : > { %v1688_v29 = vpop.eup %1687 }
 0x221   : > { %v1690_v30 = vpop.eup %1689 }
 0x222   : > { %v1692_v31 = vpop.eup %1691 }
 0x223   : > { %v1694_v32 = vpop.eup %1693 }
 0x224 PF: > { %v1113_v28 = vsub.f32 %v2458_v43, %v493_v4  ;;  %v1137_v34 = vld [vmem:[%s2489_s30] sm:$0xff]  ;;  %v1114_v35 = vsub.f32 %v2462_v45, %v494_v10  ;;  %v1138_v36 = vld [vmem:[%s2489_s30 + $0x8] sm:$0xff]  ;;  %v1115_v37 = vsub.f32 %v2460_v44, %v495_v9  ;;  %v1139_v38 = vld [vmem:[%s2489_s30 + $0x10] sm:$0xff]  ;;  %v1116_v39 = vsub.f32 %v2464_v46, %v496_v14  ;;  %s2717_s10 = sld [smem:[#allocation27_spill]] }
 0x225   : > { %v1140_v8 = vld [vmem:[%s2489_s30 + $0x18] sm:$0xff]  ;;  %v1117_v40 = vsub.f32 %v1688_v29, %v497_v49  ;;  %v1141_v4 = vld [vmem:[%s2489_s30 + $0x20] sm:$0xff]  ;;  %v1118_v2 = vsub.f32 %v1692_v31, %v498_v52  ;;  %v1142_v10 = vld [vmem:[%s2489_s30 + $0x28] sm:$0xff]  ;;  %v1119_v41 = vsub.f32 %v1690_v30, %v499_v51  ;;  %v1120_v9 = vsub.f32 %v1694_v32, %v500_v55 }
 0x226   : > { %v1121_v3 = vand.u32 2147483647, %v1113_v28  ;;  %v1122_v14 = vand.u32 2147483647, %v1114_v35  ;;  %v1123_v42 = vand.u32 2147483647, %v1115_v37 }
 0x227   : > { %v1124_v43 = vand.u32 2147483647, %v1116_v39  ;;  %v1125_v44 = vand.u32 2147483647, %v1117_v40  ;;  %v1126_v45 = vand.u32 2147483647, %v1118_v2 }
 0x228   : > { %v1145_v46 = vadd.f32 %v1137_v34, %v1121_v3  ;;  %v1146_v47 = vadd.f32 %v1138_v36, %v1122_v14  ;;  %v1147_v49 = vadd.f32 %v1139_v38, %v1123_v42  ;;  %v1127_v50 = vand.u32 2147483647, %v1119_v41  ;;  %v1143_v48 = vld [vmem:[%s2489_s30 + $0x30] sm:$0xff]  ;;  %v1144_v51 = vld [vmem:[%s2489_s30 + $0x38] sm:$0xff] }
 0x229   : > { %v1148_v52 = vadd.f32 %v1140_v8, %v1124_v43  ;;  %v1149_v53 = vadd.f32 %v1141_v4, %v1125_v44  ;;  %v1150_v54 = vadd.f32 %v1142_v10, %v1126_v45  ;;  %v1128_v55 = vand.u32 2147483647, %v1120_v9 }
 0x22a   : > { %1153 = vst [vmem:[%s2489_s30] sm:$0xff] %v1145_v46  ;;  %1154 = vst [vmem:[%s2489_s30 + $0x8] sm:$0xff] %v1146_v47  ;;  %v1151_v56 = vadd.f32 %v1143_v48, %v1127_v50  ;;  %p1499_p5 = scmp.ne.s32.totalorder %s2717_s10, 1 }
 0x22b   : > { %1155 = vst [vmem:[%s2489_s30 + $0x10] sm:$0xff] %v1147_v49  ;;  %1156 = vst [vmem:[%s2489_s30 + $0x18] sm:$0xff] %v1148_v52  ;;  %v1152_v57 = vadd.f32 %v1144_v51, %v1128_v55 }
 0x22c   : > { %1157 = vst [vmem:[%s2489_s30 + $0x20] sm:$0xff] %v1149_v53  ;;  %1158 = vst [vmem:[%s2489_s30 + $0x28] sm:$0xff] %v1150_v54  ;;  %1164 = sbr.rel (%p1499_p5) target bundleno = 568 (0x238), region = 84 }
 0x22d   : > { %1159 = vst [vmem:[%s2489_s30 + $0x30] sm:$0xff] %v1151_v56  ;;  %1160 = vst [vmem:[%s2489_s30 + $0x38] sm:$0xff] %v1152_v57 }
 0x231   : > { %v1165_v58 = vld [vmem:[%s2489_s30] sm:$0xff] (!%p1499_p5)  ;;  %v1166_v59 = vld [vmem:[%s2489_s30 + $0x8] sm:$0xff] (!%p1499_p5) }
 0x232   : > { %v1167_v60 = vld [vmem:[%s2489_s30 + $0x10] sm:$0xff] (!%p1499_p5)  ;;  %v1173_v61 = vmul.f32 (!%p1499_p5), 3.0517578e-05, %v1165_v58  ;;  %v1174_v62 = vmul.f32 (!%p1499_p5), 3.0517578e-05, %v1166_v59  ;;  %v1168_v0 = vld [vmem:[%s2489_s30 + $0x18] sm:$0xff] (!%p1499_p5) }
 0x233   : > { %v1175_v63 = vmul.f32 3.0517578e-05, %v1167_v60  ;;  %v1169_v1 = vld [vmem:[%s2489_s30 + $0x20] sm:$0xff]  ;;  %v1170_v5 = vld [vmem:[%s2489_s30 + $0x28] sm:$0xff]  ;;  %v1176_v11 = vmul.f32 3.0517578e-05, %v1168_v0 }
 0x234   : > { %v1177_v13 = vmul.f32 3.0517578e-05, %v1169_v1  ;;  %v1178_v12 = vmul.f32 3.0517578e-05, %v1170_v5  ;;  %v1171_v15 = vld [vmem:[%s2489_s30 + $0x30] sm:$0xff]  ;;  %v1172_v16 = vld [vmem:[%s2489_s30 + $0x38] sm:$0xff]  ;;  %1181 = vst [vmem:[%s2489_s30] sm:$0xff] %v1173_v61  ;;  %1182 = vst [vmem:[%s2489_s30 + $0x8] sm:$0xff] %v1174_v62 }
 0x235   : > { %1183 = vst [vmem:[%s2489_s30 + $0x10] sm:$0xff] %v1175_v63  ;;  %v1179_v17 = vmul.f32 3.0517578e-05, %v1171_v15  ;;  %v1180_v18 = vmul.f32 3.0517578e-05, %v1172_v16  ;;  %1184 = vst [vmem:[%s2489_s30 + $0x18] sm:$0xff] %v1176_v11 }
 0x236   : > { %1185 = vst [vmem:[%s2489_s30 + $0x20] sm:$0xff] %v1177_v13  ;;  %1186 = vst [vmem:[%s2489_s30 + $0x28] sm:$0xff] %v1178_v12 }
 0x237   : > { %1187 = vst [vmem:[%s2489_s30 + $0x30] sm:$0xff] %v1179_v17  ;;  %1188 = vst [vmem:[%s2489_s30 + $0x38] sm:$0xff] %v1180_v18 }
 0x238 PF: > { %s2718_s19 = sld [smem:[#allocation28_spill]]  ;;  %s2719_s8 = sld [smem:[#allocation29_spill]] }
 0x239   : > { %s1206_s27 = sshll.u32 %s2489_s30, 4  ;;  %s2720_s13 = sld [smem:[#allocation46_spill]]  ;;  %s2556_s27 = int_to_ptr.vmem [resolvable:$true] %s1206_s27 }
 0x23a   : > { %s1190_s29 = scalar_lea.sflag [#allocation4], %s468_s0  ;;  %s1856_s6 = scalar_lea.vmem %s2556_s27, 1024 }
 0x23b   : > { %p1857_p11 = scmp.ne.s32.totalorder %s2556_s27, %s1856_s6  ;;  %p2722_p13 = scmp.ne.s32.totalorder %s2688_s16, 0 }
 0x23c   : > { %s2027_s23 = smov [#allocation16]  }
 0x23d   : > { %p1858_p9 = pnand %p1857_p11, %p2722_p13  ;;  %s1860_s4 = sshll.u32 %s2027_s23, 4  ;;  %s1861_s4 = int_to_ptr.vmem [resolvable:$false] %s1860_s4 }
 0x23e   : > { %s1501_s1 = sshll.u32 %s2718_s19, 3  ;;  %s1502_s14 = sshll.u32 %s2719_s8, 4 }
 0x23f   : > { %s1202_s15 = sadd.s32 %s1502_s14, %s1501_s1  ;;  %s2721_s17 = smov %s2720_s13 }
 0x240   : > { %s1503_s18 = sshll.u32 %s1202_s15, 7  ;;  %p1859_p0 = pneg %p1858_p9 }
 0x241   : > { %s1204_s26 = scalar_lea.hbm %s2720_s13, %s1503_s18  ;;  %s1862_s20 = scalar_lea.vmem %s1861_s4, 2048 }
 0x242   : > { %p1863_p3 = scmp.lt.s32.totalorder %s2556_s27, %s1861_s4  ;;  %p1864_p4 = scmp.lt.s32.totalorder %s1862_s20, %s1856_s6 }
 0x244   : > { %p1865_p1 = por %p1864_p4, %p1863_p3 }
 0x246   : > { %p1866_p6 = pnand %p1865_p1, %p1859_p0 }
 0x248   : > { %1869 = shalt.err (!%p1866_p6)
}
 0x249   : > { %s1870_s3 = scalar_lea.hbm %s1204_s26, 1024  ;;  %s1874_s9 = scalar_lea.hbm %s2721_s17, 4096 }
 0x24a   : > { %p1871_p8 = scmp.ne.s32.totalorder %s1204_s26, %s1870_s3  ;;  %p1875_p2 = scmp.lt.u32.totalorder %s1204_s26, %s2721_s17 }
 0x24b   : > { %p1876_p10 = scmp.lt.u32.totalorder %s1874_s9, %s1870_s3  ;;  %p1878_p11 = scmp.lt.u32.totalorder %s1870_s3, %s1204_s26 }
 0x24c   : > { %p1872_p12 = pnand %p1871_p8, %p2722_p13 }
 0x24d   : > { %p1877_p5 = por %p1876_p10, %p1875_p2 }
 0x24e   : > { %p1873_p7 = pneg %p1872_p12 }
 0x24f   : > { %p1879_p9 = por %p1878_p11, %p1877_p5 }
 0x251   : > { %p1880_p0 = pnand %p1879_p9, %p1873_p7 }
 0x253   : > { %1883 = shalt.err (!%p1880_p0)
}
 0x254   : > { %1528 = dma.vmem_to_hbm [thread:$0]  (%p2722_p13), %s2556_s27, 1024, %s1204_s26, %s1190_s29  }
 0x255 PF: > { %s2723_s10 = sld [smem:[#allocation32_spill]]  ;;  %s2724_s19 = sld [smem:[#allocation24_spill]] }
 0x256   : > { %s2725_s8 = sld [smem:[#allocation38_spill]] }
 0x25b   : > { %p1566_p3 = scmp.ge.s32.totalorder %s2723_s10, 2  ;;  %s1218_s1 = sand.u32 1, %s2724_s19  }
 0x25c   : > { %p2726_p4 = scmp.ne.s32.totalorder %s2725_s8, 0  ;;  %s1219_s14 = scalar_lea.sflag [#allocation4], %s1218_s1 }
 0x25e   : > { %p1554_p1 = pnand %p1566_p3, %p2726_p4 }
 0x260   : > { %1961 = dma.done.wait (!%p1554_p1), %s1219_s14, 1024  }
 0x261   : > { %1963 = vsyncadd (!%p1554_p1), %s1219_s14, 4294966272  ;;  %s30_s13 = sadd.s32 1, %s2723_s10   ;;  %s2728_s16 = sld [smem:[#allocation25_spill]] }
 0x262   : > { %p2584_p6 = scmp.ge.s32.totalorder %s30_s13, 10   ;;  %s2729_s26 = sld [smem:[#allocation37_spill]] }
 0x263   : > { %s2730_s18 = sld [smem:[#allocation26_spill]]  ;;  %s2731_s29 = sld [smem:[#allocation36_spill]] }
 0x264   : > { %s2732_s30 = sld [smem:[#allocation30_spill]]  ;;  %s2733_s8 = sld [smem:[#allocation31_spill]] }
 0x265   : > { %s2734_s10 = sld [smem:[#allocation33_spill]]  ;;  %s2735_s11 = sld [smem:[#allocation34_spill]] }
 0x266   : > { %s2736_s22 = sld [smem:[#allocation35_spill]]  ;;  %s2737_s24 = smov %s1970_s25 }
 0x267   : > { %s2738_s25 = smov %s2728_s16  ;;  %s2739_s27 = smov %s1982_s28 }
 0x268   : > { %s2741_s9 = smov %s2010_s12  ;;  %29 = sbr.rel (!%p2584_p6) target bundleno = 25 (0x19), region = 143 }
 0x269   : > { %s2740_s28 = smov %s2730_s18 }
 0x26c   : > { %s2742_s12 = smov %s2736_s22 }
 0x26f   :  { %1224 = vsyncpa [#allocation3], 1 }
 0x270   :  { %1226 = vsyncpa [#allocation3 + $0x1], 1 }
 0x271   :  { %1227 = vsyncpa [#allocation12], 1 }
 0x272   :  { %1229 = vsyncpa [#allocation12 + $0x1], 1 }
 0x273   :  { %1230 = vsyncpa [#allocation15], 1 }
 0x274   :  { %1231 = vsyncpa [#allocation4], 1 }
 0x275   :  { %1233 = vsyncpa [#allocation4 + $0x1], 1 }
 0x276   :  { %1234 = vsyncpa [#allocation5], 1 }
 0x277   :  { %1236 = vsyncpa [#allocation5 + $0x1], 1 }
 0x278   :  { %1237 = vsyncpa [#allocation6], 1 }
 0x279   :  { %1239 = vsyncpa [#allocation6 + $0x1], 1 }
 0x27a   :  { %1240 = vsyncpa [#allocation9], 1 }

</bundles_post_ra>
